<compile_context>
chip_gen: v5e
topology: v5e:2x2
jax: 0.10.0
libtpu: 0.0.40
codegen_flags: <defaults>
</compile_context>

<pallas_src>
import jax
import jax.numpy as jnp
import numpy as np
from jax.experimental import pallas as pl
from jax.experimental.pallas import tpu as pltpu


def _build_pe_table(d_model: int, max_len: int = 100) -> jnp.ndarray:
    """Deterministic sinusoidal table, identical math to the PyTorch __init__."""
    # Same limitation as the PyTorch original: the interleaved sin/cos write requires
    # an even d_model; assert instead of silently mis-shaping.
    assert d_model % 2 == 0, "PositionalEncoding requires an even d_model"
    position = jnp.arange(0, max_len, dtype=jnp.float32)[:, None]            # (max_len, 1)
    div_term = jnp.exp(
        jnp.arange(0, d_model, 2, dtype=jnp.float32) * (-np.log(10000.0) / d_model)
    )                                                                        # (d_model//2,)
    pe = jnp.zeros((max_len, d_model), dtype=jnp.float32)
    pe = pe.at[:, 0::2].set(jnp.sin(position * div_term))
    pe = pe.at[:, 1::2].set(jnp.cos(position * div_term))
    return pe


def _pe_add_kernel(x_ref, pe_ref, o_ref):
    # x_ref : (TR, TC) VMEM tile of the flattened (B, S*D) input
    # pe_ref: (1,  TC) VMEM tile of the flattened positional-encoding row (broadcast over rows)
    # o_ref : (TR, TC) VMEM tile of the output (HBM-aliased with x)
    o_ref[...] = x_ref[...] + pe_ref[...]


def positional_encoding_forward(x: jnp.ndarray, pe: jnp.ndarray, start_idx=0) -> jnp.ndarray:
    """x: (B, S, D); pe: (max_len, D); returns x + pe[start_idx:start_idx+S][None]."""
    B, S, D = x.shape
    max_len, d_model = pe.shape
    assert d_model == D, "pe feature dim must match x's d_model"
    assert max_len >= S, "sequence length exceeds positional-encoding table"

    # Slice only the needed (S, D) window in the wrapper. lax.dynamic_slice clamps the
    # start index so start_idx + S never reads past the table (no silent OOB VMEM reads).
    start = jnp.asarray(start_idx, dtype=jnp.int32)
    pe_win = jax.lax.dynamic_slice_in_dim(pe, start, S, axis=0)              # (S, D)

    # Lane-dense flattening: last dim becomes S*D (a multiple of 128 for typical shapes),
    # so stores are full-width vst instead of masked partial stores at D=32.
    rows, cols = B, S * D
    x2 = x.reshape(rows, cols)
    pe2 = pe_win.reshape(1, cols).astype(x.dtype)

    # Tile sizes: ~2 MiB f32 blocks -> double-buffered in+out stays ~8 MiB VMEM, which fits
    # every generation's scoped default (v5e 16 MiB, v6e 32 MiB, v7x 32 MiB of 64 MiB).
    ROW_TILE = 256
    COL_TILE = 2048  # multiple of 128 lanes
    tile_rows = rows if rows <= ROW_TILE else ROW_TILE
    if cols % 128 == 0 and cols > COL_TILE:
        tile_cols = COL_TILE
    else:
        tile_cols = cols  # full extent (always legal per the (8,128) BlockSpec rule)

    grid = (pl.cdiv(rows, tile_rows), pl.cdiv(cols, tile_cols))

    out2 = pl.pallas_call(
        _pe_add_kernel,
        out_shape=jax.ShapeDtypeStruct((rows, cols), x.dtype),
        grid=grid,
        in_specs=[
            pl.BlockSpec((tile_rows, tile_cols), lambda i, j: (i, j)),
            # pe row: constant block index along rows -> stays resident across row tiles.
            pl.BlockSpec((1, tile_cols), lambda i, j: (0, j)),
        ],
        out_specs=pl.BlockSpec((tile_rows, tile_cols), lambda i, j: (i, j)),
        # out = x + pe is an in-place-friendly op: reuse x's HBM buffer for the output.
        input_output_aliases={0: 0},
        compiler_params=pltpu.CompilerParams(
            dimension_semantics=("parallel", "parallel"),
        ),
    )(x2, pe2)

    return out2.reshape(B, S, D)


if __name__ == "__main__":
    # --- Small shapes consistent with the module's forward: x is (batch, seq, d_model). ---
    B, S, D = 2, 8, 32
    MAX_LEN = 100
    START_IDX = 3

    key = jax.random.PRNGKey(0)
    x = jax.random.normal(key, (B, S, D), dtype=jnp.float32)
    pe = _build_pe_table(D, MAX_LEN)

    fwd = jax.jit(positional_encoding_forward)
    out = jax.block_until_ready(fwd(x, pe, START_IDX))

    ref = x + pe[START_IDX:START_IDX + S][None, :, :]
    np.testing.assert_allclose(np.asarray(out), np.asarray(ref), rtol=1e-6, atol=1e-6)

    # --- Larger shape to exercise the multi-block, pipelined path (grid = (2, 2)). ---
    B2, S2, D2 = 512, 32, 128
    x_big = jax.random.normal(jax.random.PRNGKey(1), (B2, S2, D2), dtype=jnp.float32)
    pe_big = _build_pe_table(D2, MAX_LEN)
    out_big = jax.block_until_ready(jax.jit(positional_encoding_forward)(x_big, pe_big, 5))
    ref_big = x_big + pe_big[5:5 + S2][None, :, :]
    np.testing.assert_allclose(np.asarray(out_big), np.asarray(ref_big), rtol=1e-6, atol=1e-6)

    print("KERNEL_OK")
</pallas_src>

<mosaic_0001>
module attributes {stable_mosaic.version = 11 : i64} {
  func.func @_pe_add_kernel(%arg0: i32, %arg1: i32, %arg2: memref<2x256xf32, #tpu.memory_space<vmem>>, %arg3: memref<1x256xf32, #tpu.memory_space<vmem>>, %arg4: memref<2x256xf32, #tpu.memory_space<vmem>>) attributes {dimension_semantics = [#tpu.dimension_semantics<parallel>, #tpu.dimension_semantics<parallel>], iteration_bounds = array<i64: 1, 1>, scalar_prefetch = 0 : i64, scratch_operands = 0 : i64, tpu.core_type = #tpu.core_type<tc>, window_params = [{transform_indices = @transform_0, window_bounds = array<i64: 2, 256>}, {transform_indices = @transform_1, window_bounds = array<i64: 1, 256>}, {transform_indices = @transform_2, window_bounds = array<i64: 2, 256>}]} {
    %c0 = arith.constant 0 : index
    %c0_0 = arith.constant 0 : index
    %0 = vector.load %arg2[%c0, %c0_0] : memref<2x256xf32, #tpu.memory_space<vmem>>, vector<2x256xf32>
    %c0_1 = arith.constant 0 : index
    %c0_2 = arith.constant 0 : index
    %1 = vector.load %arg3[%c0_1, %c0_2] : memref<1x256xf32, #tpu.memory_space<vmem>>, vector<1x256xf32>
    %2 = vector.broadcast %1 : vector<1x256xf32> to vector<2x256xf32>
    %3 = arith.addf %0, %2 : vector<2x256xf32>
    %c0_3 = arith.constant 0 : index
    %c0_4 = arith.constant 0 : index
    %4 = vector.load %arg4[%c0_3, %c0_4] : memref<2x256xf32, #tpu.memory_space<vmem>>, vector<2x256xf32>
    tpu.vector_store %arg4[%c0_3, %c0_4], %3 {strides = array<i32>} : memref<2x256xf32, #tpu.memory_space<vmem>>, vector<2x256xf32>,
    return
  }
  func.func @transform_0(%arg0: i32, %arg1: i32) -> (i32, i32) {
    %c0_i32 = arith.constant 0 : i32
    return %arg0, %arg1 : i32, i32
  }
  func.func @transform_1(%arg0: i32, %arg1: i32) -> (i32, i32) {
    %c0_i32 = arith.constant 0 : i32
    %c0_i32_0 = arith.constant 0 : i32
    return %c0_i32, %arg1 : i32, i32
  }
  func.func @transform_2(%arg0: i32, %arg1: i32) -> (i32, i32) {
    %c0_i32 = arith.constant 0 : i32
    return %arg0, %arg1 : i32, i32
  }
}

</mosaic_0001>

<bundles_post_ra>
// kernel: positional_encoding_forward.1
= control target key start
LH: loop header
LB: loop body
LE: loop exit
PB: predicated region body
PF: predicated region fallthrough
CT: control target
= control target key end

     0   :  { %vm17_vm0 = vcmask 1041408   ;;  %s50_s1 = inlined_call_operand.vmem [shape: f32[1,256], index: 1, kind: input, shape index: {}]   ;;  %s51_s0 = inlined_call_operand.vmem [shape: f32[2,256], index: 0, kind: input, shape index: {}, may-alias: {0,2}]   ;;  %s52_s2 = inlined_call_operand.vmem [shape: f32[2,256], index: 2, kind: output, shape index: {}, may-alias: {0,2}]  }
   0x1   :  { %v12_v0 = vld [vmem:[%s50_s1] sm:$0x3] }
   0x2   :  { %v14_v1 = vperm.slane %v12_v0, 0  ;;  %v15_v2 = vperm.slane %v12_v0, 1  ;;  %v11_v3 = vld [vmem:[%s51_s0] sm:$0xf] }
   0x4   :  { %v16_v4 = vrot.slane %v15_v2, 6 }
   0x6   :  { %v18_v5 = vsel %vm17_vm0, %v14_v1, %v16_v4 }
   0x7   :  { %v20_v6 = vadd.f32 %v18_v5, %v11_v3 }
   0x9   :  { %21 = vst [vmem:[%s52_s2] sm:$0xf] %v20_v6 }

</bundles_post_ra>
